<compile_context>
chip_gen: v7x
topology: tpu7x:2x2x1
jax: 0.10.0
libtpu: 0.0.40
codegen_flags: <defaults>
</compile_context>

<pallas_src>
import math

import jax
import jax.numpy as jnp
from jax.experimental import pallas as pl
from jax.experimental.pallas import tpu as pltpu

_LANES = 128
_SUBLANES = 8
_MAX_TILE_ROWS = 4096  # 4096*128*4B = 2 MiB per f32 buffer


def _cdiv(a, b):
    return -(-a // b)


def _make_kernel(tile_rows, n_chunks, valid_rows_last, is_complex):
    """Build the NMSE kernel for a fixed (static) tiling configuration."""
    ragged = valid_rows_last != tile_rows
    groups = tile_rows // _SUBLANES
    last = n_chunks - 1

    def accumulate(p, t, acc_err, acc_nrm):
        if is_complex:
            # Lanes carry real/imag interleaved: r0 i0 r1 i1 ...
            p2 = p * p
            t2 = t * t
            # Pair sums (|z|^2 = re^2 + im^2) via one XLU lane-roll per array.
            # Depending on the rotate direction the valid pair sums land on the
            # even or the odd lanes; the epilogue selects them with a
            # direction-agnostic probe mask.  Invalid lanes hold finite,
            # non-negative cross-pair garbage (safe under sqrt).
            p2p = p2 + pltpu.roll(p2, shift=1, axis=1)
            t2p = t2 + pltpu.roll(t2, shift=1, axis=1)
            d = jnp.sqrt(p2p) - jnp.sqrt(t2p)   # |p| - |t| on the valid lanes
            err = d * d
            nrm = t2                            # sum|t|^2 == sum of all t^2
        else:
            d = p - t
            err = d * d
            nrm = t * t
        # Reduce each tile to one (8, 128) vreg-slab (pure VALU, no cross-lane
        # movement), then a single small accumulator update.
        acc_err[...] += jnp.sum(err.reshape(groups, _SUBLANES, _LANES), axis=0)
        acc_nrm[...] += jnp.sum(nrm.reshape(groups, _SUBLANES, _LANES), axis=0)

    def kernel(p_ref, t_ref, out_ref, acc_err, acc_nrm):
        c = pl.program_id(1)

        @pl.when(c == 0)
        def _():
            acc_err[...] = jnp.zeros_like(acc_err)
            acc_nrm[...] = jnp.zeros_like(acc_nrm)

        p = p_ref[0].astype(jnp.float32)        # (tile_rows, 128)
        t = t_ref[0].astype(jnp.float32)

        if ragged:
            # Last chunk overruns the array: mask the out-of-bounds rows to 0
            # before accumulating (OOB contents are unspecified).
            @pl.when(c != last)
            def _():
                accumulate(p, t, acc_err, acc_nrm)

            @pl.when(c == last)
            def _():
                row = jax.lax.broadcasted_iota(jnp.int32, (tile_rows, _LANES), 0)
                ok = row < valid_rows_last
                accumulate(jnp.where(ok, p, 0.0), jnp.where(ok, t, 0.0),
                           acc_err, acc_nrm)
        else:
            accumulate(p, t, acc_err, acc_nrm)

        @pl.when(c == last)
        def _():
            if is_complex:
                # Select the lanes that received their pair partner from the
                # roll used in accumulate(): lane j is valid iff
                # roll(iota, 1, axis=1)[j] == j ^ 1, whatever the direction.
                lane = jax.lax.broadcasted_iota(jnp.int32, (_SUBLANES, _LANES), 1)
                probe = pltpu.roll(lane, shift=1, axis=1)
                valid = probe == (lane ^ 1)
                err = jnp.sum(jnp.where(valid, acc_err[...], 0.0))
            else:
                err = jnp.sum(acc_err[...])
            nrm = jnp.sum(acc_nrm[...])
            out_ref[...] = jnp.full(out_ref.shape, err / nrm, dtype=jnp.float32)

    return kernel


def _prepare(x, n_flat, rows):
    """Flatten per-sample dims -> (B, rows, 128); pad only if n_flat % 128 != 0."""
    b = x.shape[0]
    x = x.reshape(b, n_flat)
    padded = rows * _LANES
    if padded != n_flat:
        # Uncommon case (per-sample size not a multiple of 128): pays one HBM
        # copy; zero padding keeps both sums exact.
        x = jnp.pad(x, ((0, 0), (0, padded - n_flat)))
    return x.reshape(b, rows, _LANES)


def nmse_loss(pred, target, *, max_tile_rows=_MAX_TILE_ROWS):
    """Normalized MSE loss, matching NMSELoss.forward semantics."""
    assert pred.shape == target.shape
    assert max_tile_rows % _SUBLANES == 0
    b = pred.shape[0]
    is_complex = pred.shape[-1] == 2
    n_flat = math.prod(pred.shape[1:])          # includes trailing 2 (interleaved)

    rows = _cdiv(n_flat, _LANES)
    tile_rows = min(max_tile_rows, _cdiv(rows, _SUBLANES) * _SUBLANES)
    n_chunks = _cdiv(rows, tile_rows)
    valid_rows_last = rows - (n_chunks - 1) * tile_rows

    p3 = _prepare(pred, n_flat, rows)
    t3 = _prepare(target, n_flat, rows)

    kernel = _make_kernel(tile_rows, n_chunks, valid_rows_last, is_complex)
    block = pl.BlockSpec((1, tile_rows, _LANES), lambda bi, ci: (bi, ci, 0))

    ratio = pl.pallas_call(
        kernel,
        out_shape=jax.ShapeDtypeStruct((b, 1, _LANES), jnp.float32),
        grid=(b, n_chunks),
        in_specs=[block, block],
        out_specs=pl.BlockSpec((1, 1, _LANES), lambda bi, ci: (bi, 0, 0)),
        scratch_shapes=[
            pltpu.VMEM((_SUBLANES, _LANES), jnp.float32),
            pltpu.VMEM((_SUBLANES, _LANES), jnp.float32),
        ],
        compiler_params=pltpu.CompilerParams(
            dimension_semantics=("parallel", "arbitrary")),
    )(p3, t3)

    # Per-sample err/nrm ratios -> mean over batch (tiny, plain JAX).
    return jnp.mean(ratio[:, 0, 0])


def _nmse_ref(pred, target):
    """Pure-JAX reference mirroring the PyTorch module exactly."""
    pred = pred.astype(jnp.float32)
    target = target.astype(jnp.float32)
    if pred.shape[-1] == 2:
        pred = jnp.sqrt(pred[..., 0] ** 2 + pred[..., 1] ** 2)
        target = jnp.sqrt(target[..., 0] ** 2 + target[..., 1] ** 2)
    axes = tuple(range(1, pred.ndim))
    error = jnp.sum((pred - target) ** 2, axis=axes)
    norm = jnp.sum(target ** 2, axis=axes)
    return jnp.mean(error / norm)


def _check(pred, target, rtol, atol, **kw):
    out = jax.block_until_ready(nmse_loss(pred, target, **kw))
    ref = jax.block_until_ready(_nmse_ref(pred, target))
    assert jnp.allclose(out, ref, rtol=rtol, atol=atol), (out, ref)


if __name__ == "__main__":
    key = jax.random.PRNGKey(0)
    ks = jax.random.split(key, 12)

    # 1) Complex path [B, C, H, W, 2], single chunk, f32 (direct |p|-|t| math).
    _check(jax.random.normal(ks[0], (2, 4, 16, 16, 2), dtype=jnp.float32),
           jax.random.normal(ks[1], (2, 4, 16, 16, 2), dtype=jnp.float32),
           rtol=1e-5, atol=1e-6)

    # 2) Real path [B, C, H, W], single chunk, f32.
    _check(jax.random.normal(ks[2], (2, 4, 16, 16), dtype=jnp.float32),
           jax.random.normal(ks[3], (2, 4, 16, 16), dtype=jnp.float32),
           rtol=1e-5, atol=1e-6)

    # 3) Real path, multi-chunk + ragged last chunk (exercises in-kernel mask).
    _check(jax.random.normal(ks[4], (2, 3, 20, 20), dtype=jnp.float32),
           jax.random.normal(ks[5], (2, 3, 20, 20), dtype=jnp.float32),
           rtol=1e-5, atol=1e-6, max_tile_rows=8)

    # 4) Complex path, multi-chunk + ragged + lane padding.
    _check(jax.random.normal(ks[6], (2, 3, 20, 20, 2), dtype=jnp.float32),
           jax.random.normal(ks[7], (2, 3, 20, 20, 2), dtype=jnp.float32),
           rtol=1e-5, atol=1e-6, max_tile_rows=8)

    # 5) Complex path, bf16 inputs streamed as-is (in-kernel upcast).
    _check(jax.random.normal(ks[8], (2, 4, 16, 16, 2), dtype=jnp.bfloat16),
           jax.random.normal(ks[9], (2, 4, 16, 16, 2), dtype=jnp.bfloat16),
           rtol=1e-4, atol=1e-5)

    # 6) Real path where the single block is larger than the row extent
    #    (rows=10, tile_rows=16): partial block + mask.
    _check(jax.random.normal(ks[10], (2, 3, 20, 20), dtype=jnp.float32),
           jax.random.normal(ks[11], (2, 3, 20, 20), dtype=jnp.float32),
           rtol=1e-5, atol=1e-6)

    print("KERNEL_OK")
</pallas_src>

<mosaic_0001>
module attributes {stable_mosaic.version = 11 : i64} {
  func.func @kernel(%arg0: i32, %arg1: i32, %arg2: memref<1x16x128xf32, #tpu.memory_space<vmem>>, %arg3: memref<1x16x128xf32, #tpu.memory_space<vmem>>, %arg4: memref<1x1x128xf32, #tpu.memory_space<vmem>>, %arg5: memref<8x128xf32, #tpu.memory_space<vmem>>, %arg6: memref<8x128xf32, #tpu.memory_space<vmem>>) attributes {dimension_semantics = [#tpu.dimension_semantics<parallel>, #tpu.dimension_semantics<arbitrary>], iteration_bounds = array<i64: 2, 1>, scalar_prefetch = 0 : i64, scratch_operands = 2 : i64, tpu.core_type = #tpu.core_type<tc>, window_params = [{transform_indices = @transform_0, window_bounds = array<i64: 1, 16, 128>}, {transform_indices = @transform_1, window_bounds = array<i64: 1, 16, 128>}, {transform_indices = @transform_2, window_bounds = array<i64: 1, 1, 128>}]} {
    %c0_i32 = arith.constant 0 : i32
    %0 = arith.cmpi eq, %arg1, %c0_i32 : i32
    %1 = arith.extui %0 : i1 to i32
    %c0_i32_0 = arith.constant 0 : i32
    %2 = arith.cmpi ne, %1, %c0_i32_0 : i32
    scf.if %2 {
      %cst_18 = arith.constant 0.000000e+00 : f32
      %30 = vector.broadcast %cst_18 : f32 to vector<8x128xf32>
      %c0_19 = arith.constant 0 : index
      %c0_20 = arith.constant 0 : index
      %31 = vector.load %arg5[%c0_19, %c0_20] : memref<8x128xf32, #tpu.memory_space<vmem>>, vector<8x128xf32>
      tpu.vector_store %arg5[%c0_19, %c0_20], %30 {strides = array<i32>} : memref<8x128xf32, #tpu.memory_space<vmem>>, vector<8x128xf32>,
      %cst_21 = arith.constant 0.000000e+00 : f32
      %32 = vector.broadcast %cst_21 : f32 to vector<8x128xf32>
      %c0_22 = arith.constant 0 : index
      %c0_23 = arith.constant 0 : index
      %33 = vector.load %arg6[%c0_22, %c0_23] : memref<8x128xf32, #tpu.memory_space<vmem>>, vector<8x128xf32>
      tpu.vector_store %arg6[%c0_22, %c0_23], %32 {strides = array<i32>} : memref<8x128xf32, #tpu.memory_space<vmem>>, vector<8x128xf32>,
    } else {
    }
    %c0 = arith.constant 0 : index
    %c0_1 = arith.constant 0 : index
    %c0_2 = arith.constant 0 : index
    %3 = vector.load %arg2[%c0, %c0_1, %c0_2] : memref<1x16x128xf32, #tpu.memory_space<vmem>>, vector<1x16x128xf32>
    %4 = vector.shape_cast %3 : vector<1x16x128xf32> to vector<16x128xf32>
    %c0_3 = arith.constant 0 : index
    %c0_4 = arith.constant 0 : index
    %c0_5 = arith.constant 0 : index
    %5 = vector.load %arg3[%c0_3, %c0_4, %c0_5] : memref<1x16x128xf32, #tpu.memory_space<vmem>>, vector<1x16x128xf32>
    %6 = vector.shape_cast %5 : vector<1x16x128xf32> to vector<16x128xf32>
    %7 = arith.mulf %4, %4 : vector<16x128xf32>
    %8 = arith.mulf %6, %6 : vector<16x128xf32>
    %c1_i32 = arith.constant 1 : i32
    %9 = tpu.dynamic_rotate %7 by %c1_i32 dim 1 : vector<16x128xf32>, i32 -> vector<16x128xf32>
    %10 = arith.addf %7, %9 : vector<16x128xf32>
    %c1_i32_6 = arith.constant 1 : i32
    %11 = tpu.dynamic_rotate %8 by %c1_i32_6 dim 1 : vector<16x128xf32>, i32 -> vector<16x128xf32>
    %12 = arith.addf %8, %11 : vector<16x128xf32>
    %13 = math.sqrt %10 : vector<16x128xf32>
    %14 = math.sqrt %12 : vector<16x128xf32>
    %15 = arith.subf %13, %14 : vector<16x128xf32>
    %16 = arith.mulf %15, %15 : vector<16x128xf32>
    %c0_7 = arith.constant 0 : index
    %c0_8 = arith.constant 0 : index
    %17 = vector.load %arg5[%c0_7, %c0_8] : memref<8x128xf32, #tpu.memory_space<vmem>>, vector<8x128xf32>
    %18 = vector.shape_cast %16 : vector<16x128xf32> to vector<2x8x128xf32>
    %cst = arith.constant dense<0.000000e+00> : vector<8x128xf32>
    %19 = vector.multi_reduction <add>, %18, %cst [0] : vector<2x8x128xf32> to vector<8x128xf32>
    %20 = arith.addf %17, %19 : vector<8x128xf32>
    %c0_9 = arith.constant 0 : index
    %c0_10 = arith.constant 0 : index
    %21 = vector.load %arg5[%c0_9, %c0_10] : memref<8x128xf32, #tpu.memory_space<vmem>>, vector<8x128xf32>
    tpu.vector_store %arg5[%c0_9, %c0_10], %20 {strides = array<i32>} : memref<8x128xf32, #tpu.memory_space<vmem>>, vector<8x128xf32>,
    %c0_11 = arith.constant 0 : index
    %c0_12 = arith.constant 0 : index
    %22 = vector.load %arg6[%c0_11, %c0_12] : memref<8x128xf32, #tpu.memory_space<vmem>>, vector<8x128xf32>
    %23 = vector.shape_cast %8 : vector<16x128xf32> to vector<2x8x128xf32>
    %cst_13 = arith.constant dense<0.000000e+00> : vector<8x128xf32>
    %24 = vector.multi_reduction <add>, %23, %cst_13 [0] : vector<2x8x128xf32> to vector<8x128xf32>
    %25 = arith.addf %22, %24 : vector<8x128xf32>
    %c0_14 = arith.constant 0 : index
    %c0_15 = arith.constant 0 : index
    %26 = vector.load %arg6[%c0_14, %c0_15] : memref<8x128xf32, #tpu.memory_space<vmem>>, vector<8x128xf32>
    tpu.vector_store %arg6[%c0_14, %c0_15], %25 {strides = array<i32>} : memref<8x128xf32, #tpu.memory_space<vmem>>, vector<8x128xf32>,
    %c0_i32_16 = arith.constant 0 : i32
    %27 = arith.cmpi eq, %arg1, %c0_i32_16 : i32
    %28 = arith.extui %27 : i1 to i32
    %c0_i32_17 = arith.constant 0 : i32
    %29 = arith.cmpi ne, %28, %c0_i32_17 : i32
    scf.if %29 {
      %30 = tpu.iota {dimensions = array<i32: 1>} : vector<8x128xi32>
      %c1_i32_18 = arith.constant 1 : i32
      %31 = tpu.dynamic_rotate %30 by %c1_i32_18 dim 1 : vector<8x128xi32>, i32 -> vector<8x128xi32>
      %c1_i32_19 = arith.constant 1 : i32
      %32 = vector.broadcast %c1_i32_19 : i32 to vector<8x128xi32>
      %33 = arith.xori %30, %32 : vector<8x128xi32>
      %34 = arith.cmpi eq, %31, %33 : vector<8x128xi32>
      %c0_20 = arith.constant 0 : index
      %c0_21 = arith.constant 0 : index
      %35 = vector.load %arg5[%c0_20, %c0_21] : memref<8x128xf32, #tpu.memory_space<vmem>>, vector<8x128xf32>
      %cst_22 = arith.constant 0.000000e+00 : f32
      %36 = vector.broadcast %cst_22 : f32 to vector<8x128xf32>
      %37 = arith.select %34, %35, %36 : vector<8x128xi1>, vector<8x128xf32>
      %38 = vector.shape_cast %37 : vector<8x128xf32> to vector<1x8x128xf32>
      %cst_23 = arith.constant dense<0.000000e+00> : vector<1xf32>
      %39 = vector.multi_reduction <add>, %38, %cst_23 [1, 2] : vector<1x8x128xf32> to vector<1xf32>
      %40 = vector.shape_cast %39 : vector<1xf32> to vector<1x1x1xf32>
      %41 = vector.extract %40[0, 0, 0] : f32 from vector<1x1x1xf32>
      %c0_24 = arith.constant 0 : index
      %c0_25 = arith.constant 0 : index
      %42 = vector.load %arg6[%c0_24, %c0_25] : memref<8x128xf32, #tpu.memory_space<vmem>>, vector<8x128xf32>
      %43 = vector.shape_cast %42 : vector<8x128xf32> to vector<1x8x128xf32>
      %cst_26 = arith.constant dense<0.000000e+00> : vector<1xf32>
      %44 = vector.multi_reduction <add>, %43, %cst_26 [1, 2] : vector<1x8x128xf32> to vector<1xf32>
      %45 = vector.shape_cast %44 : vector<1xf32> to vector<1x1x1xf32>
      %46 = vector.extract %45[0, 0, 0] : f32 from vector<1x1x1xf32>
      %47 = arith.divf %41, %46 : f32
      %48 = vector.broadcast %47 : f32 to vector<1x1x128xf32>
      %c0_27 = arith.constant 0 : index
      %c0_28 = arith.constant 0 : index
      %c0_29 = arith.constant 0 : index
      %49 = vector.load %arg4[%c0_27, %c0_28, %c0_29] : memref<1x1x128xf32, #tpu.memory_space<vmem>>, vector<1x1x128xf32>
      tpu.vector_store %arg4[%c0_27, %c0_28, %c0_29], %48 {strides = array<i32>} : memref<1x1x128xf32, #tpu.memory_space<vmem>>, vector<1x1x128xf32>,
    } else {
    }
    return
  }
  func.func @transform_0(%arg0: i32, %arg1: i32) -> (i32, i32, i32) {
    %c0_i32 = arith.constant 0 : i32
    %c0_i32_0 = arith.constant 0 : i32
    return %arg0, %arg1, %c0_i32 : i32, i32, i32
  }
  func.func @transform_1(%arg0: i32, %arg1: i32) -> (i32, i32, i32) {
    %c0_i32 = arith.constant 0 : i32
    %c0_i32_0 = arith.constant 0 : i32
    return %arg0, %arg1, %c0_i32 : i32, i32, i32
  }
  func.func @transform_2(%arg0: i32, %arg1: i32) -> (i32, i32, i32) {
    %c0_i32 = arith.constant 0 : i32
    %c0_i32_0 = arith.constant 0 : i32
    %c0_i32_1 = arith.constant 0 : i32
    return %arg0, %c0_i32, %c0_i32_0 : i32, i32, i32
  }
}

</mosaic_0001>

<bundles_post_ra>
// kernel: tpu_custom_call.1
= control target key start
LH: loop header
LB: loop body
LE: loop exit
PB: predicated region body
PF: predicated region fallthrough
CT: control target
= control target key end

     0   :  { %7 = vsyncpa [#allocation5], 0  ;;  %s949_s0 = inlined_call_operand.hbm [shape: f32[2,16,128], index: 0, kind: input, shape index: {}]   ;;  %s950_s1 = inlined_call_operand.hbm [shape: f32[2,16,128], index: 1, kind: input, shape index: {}]   ;;  %s951_s2 = inlined_call_operand.hbm [shape: f32[2,1,128], index: 2, kind: output, shape index: {}]  }
   0x1   :  { %9 = vsyncpa [#allocation5 + $0x1], 0 }
   0x2   :  { %10 = vsyncpa [#allocation8], 0 }
   0x3   :  { %12 = vsyncpa [#allocation8 + $0x1], 0 }
   0x4   :  { %13 = vsyncpa [#allocation6], 0 }
   0x5   :  { %15 = vsyncpa [#allocation6 + $0x1], 0  ;;  %s714_s9 = smov 0   ;;  %s716_s10 = smov 0  }
   0x6   :  { %s718_s11 = smov 0   ;;  %s720_s12 = smov 0  }
   0x7   :  { %s722_s13 = smov 0   ;;  %s724_s14 = smov 0  }
   0x8 LB: > { %s441_s15 = sadd.s32 4294967295, %s691_s14   ;;  %s442_s16 = sadd.s32 4294967294, %s691_s14   ;;  %s691_s14 = sphi %s724_s14, %s21_s14   ;;  %s687_s13 = sphi %s722_s13, %s969_s13   ;;  %s683_s12 = sphi %s720_s12, %s968_s12   ;;  %s679_s11 = sphi %s718_s11, %s967_s11   ;;  %s675_s10 = sphi %s716_s10, %s966_s10   ;;  %s671_s9 = sphi %s714_s9, %s965_s9  }
   0x9   : > { %s33_s17 = sadd.s32 1, %s687_s13  ;;  %s42_s18 = sadd.s32 1, %s679_s11 }
   0xa   : > { %p35_p0 = scmp.ge.s32.totalorder %s33_s17, 2  ;;  %p49_p1 = scmp.ne.s32.totalorder %s679_s11, %s675_s10 }
   0xb   : > { %p50_p2 = scmp.eq.s32.totalorder %s691_s14, 0  ;;  %p55_p3 = scmp.ne.s32.totalorder %s675_s10, %s671_s9 }
   0xc   : > { %s971_s17 = smov (%p35_p0, %s33_s17), 0  ;;  %p56_p5 = scmp.eq.s32.totalorder %s441_s15, 0 }
   0xd   : > { %p755_p4 = por %p50_p2, %p49_p1  ;;  %s37_s20 = ssub.s32 %s687_s13, %s971_s17 }
   0xe   : > { %p107_p6 = scmp.eq.s32.totalorder %s441_s15, 1  ;;  %p40_p7 = scmp.eq.s32.totalorder %s37_s20, 0 }
   0xf   : > { %p761_p8 = por %p56_p5, %p55_p3  ;;  %p113_p10 = scmp.eq.s32.totalorder %s442_s16, 1 }
  0x10   : > { %p765_p9 = por %p107_p6, %p49_p1  ;;  %p482_p13 = scmp.lt.s32.totalorder %s691_s14, 2 }
  0x11   : > { %s955_s21 = scalar_select %p761_p8, 1, 0 }
  0x12   : > { %s956_s22 = scalar_select %p765_p9, 1, 0 }
  0x13   : > { %s770_s23 = scalar_select %p40_p7, %s679_s11, %s42_s18  }
  0x14   : > { %p772_p11 = por %p113_p10, %p55_p3  ;;  %s779_s25 = sand.u32 1, %s679_s11  }
  0x15   : > { %s445_s26 = sshll.u32 %s779_s25, 4  ;;  %s457_s27 = sshll.u32 %s687_s13, 8 }
  0x16   : > { %s957_s24 = scalar_select %p772_p11, 1, 0 }
  0x17   : > { %s788_s30 = scalar_lea.hbm %s949_s0, %s457_s27  ;;  %s137_s3 = scalar_lea.vmem [#allocation4], %s445_s26 }
  0x18   : > { %s146_s4 = sshll.u32 %s137_s3, 4  ;;  %p796_p0 = pnand %p482_p13, %p755_p4  ;;  %s792_s4 = int_to_ptr.vmem [resolvable:$true] %s146_s4 }
  0x19   : > { %s134_s6 = scalar_lea.sflag [#allocation5], %s779_s25  ;;  %s545_s7 = scalar_lea.hbm %s788_s30, 256 }
  0x1a   : > { %p546_p2 = scmp.ne.s32.totalorder %s788_s30, %s545_s7  ;;  %p547_p3 = pneg %p796_p0 }
  0x1b   : > { %s550_s16 = scalar_lea.hbm %s949_s0, 512  ;;  %p551_p4 = scmp.lt.u32.totalorder %s788_s30, %s949_s0 }
  0x1c   : > { %p548_p5 = pnand %p547_p3, %p546_p2  ;;  %p552_p7 = scmp.lt.u32.totalorder %s550_s16, %s545_s7 }
  0x1d   : > { %p554_p13 = scmp.lt.u32.totalorder %s545_s7, %s788_s30 }
  0x1e   : > { %p549_p6 = pneg %p548_p5  ;;  %p553_p10 = por %p552_p7, %p551_p4 }
  0x20   : > { %p555_p12 = por %p554_p13, %p553_p10 }
  0x22   : > { %p556_p1 = pnand %p555_p12, %p549_p6 }
  0x24   : > { %559 = shalt.err (!%p556_p1)
}
  0x25   : > { %s560_s20 = scalar_lea.vmem %s792_s4, 256  ;;  %s693_s28 = smov [#allocation4]  }
  0x26   : > { %p561_p2 = scmp.ne.s32.totalorder %s792_s4, %s560_s20  ;;  %s565_s29 = sshll.u32 %s693_s28, 4  ;;  %s566_s29 = int_to_ptr.vmem [resolvable:$false] %s565_s29 }
  0x27   : > { %s567_s3 = scalar_lea.vmem %s566_s29, 512  ;;  %p568_p9 = scmp.lt.s32.totalorder %s792_s4, %s566_s29 }
  0x28   : > { %p563_p5 = pnand %p561_p2, %p547_p3  ;;  %p569_p4 = scmp.lt.s32.totalorder %s567_s3, %s560_s20 }
  0x2a   : > { %p564_p11 = pneg %p563_p5  ;;  %p570_p7 = por %p569_p4, %p568_p9 }
  0x2c   : > { %p571_p10 = pnand %p570_p7, %p564_p11 }
  0x2e   : > { %574 = shalt.err (!%p571_p10)
}
  0x2f   : > { %s694_s7 = smov 128   ;;  %s695_s8 = smov 8  }
  0x30   : > { %474 = dma.hbm_to_vmem [thread:$0]  (!%p796_p0), %s788_s30, 256, %s792_s4, %s134_s6, %s694_s7, %s694_s7, %s695_s8  }
  0x31   : > { %p177_p9 = scmp.lt.s32.totalorder %s691_s14, 3  ;;  %s838_s18 = scalar_lea.hbm %s950_s1, %s457_s27 }
  0x32   : > { %p959_p11 = scmp.ge.s32.totalorder %s691_s14, 1  ;;  %s160_s20 = scalar_lea.vmem [#allocation7], %s445_s26 }
  0x33   : > { %s169_s28 = sshll.u32 %s160_s20, 4  ;;  %s157_s30 = scalar_lea.sflag [#allocation8], %s779_s25  ;;  %s848_s28 = int_to_ptr.vmem [resolvable:$true] %s169_s28 }
  0x34   : > { %p842_p12 = pnand %p959_p11, %p177_p9  ;;  %s575_s4 = scalar_lea.hbm %s838_s18, 256 }
  0x35   : > { %p576_p1 = scmp.ne.s32.totalorder %s838_s18, %s575_s4  ;;  %s580_s29 = scalar_lea.hbm %s950_s1, 512 }
  0x36   : > { %p581_p2 = scmp.lt.u32.totalorder %s838_s18, %s950_s1  ;;  %p582_p5 = scmp.lt.u32.totalorder %s580_s29, %s575_s4 }
  0x37   : > { %p578_p6 = pnand %p576_p1, %p547_p3  ;;  %p584_p7 = scmp.lt.u32.totalorder %s575_s4, %s838_s18 }
  0x38   : > { %p583_p4 = por %p582_p5, %p581_p2 }
  0x39   : > { %p579_p13 = pneg %p578_p6 }
  0x3a   : > { %p585_p10 = por %p584_p7, %p583_p4 }
  0x3c   : > { %p586_p9 = pnand %p585_p10, %p579_p13 }
  0x3e   : > { %589 = shalt.err (!%p586_p9)
}
  0x3f   : > { %s590_s26 = scalar_lea.vmem %s848_s28, 256  ;;  %s696_s16 = smov [#allocation7]  }
  0x40   : > { %p591_p11 = scmp.ne.s32.totalorder %s848_s28, %s590_s26  ;;  %s595_s20 = sshll.u32 %s696_s16, 4  ;;  %s596_s20 = int_to_ptr.vmem [resolvable:$false] %s595_s20 }
  0x41   : > { %s597_s27 = scalar_lea.vmem %s596_s20, 512  ;;  %p598_p8 = scmp.lt.s32.totalorder %s848_s28, %s596_s20 }
  0x42   : > { %p593_p1 = pnand %p591_p11, %p547_p3  ;;  %p599_p2 = scmp.lt.s32.totalorder %s597_s27, %s590_s26 }
  0x44   : > { %p594_p6 = pneg %p593_p1  ;;  %p600_p5 = por %p599_p2, %p598_p8 }
  0x46   : > { %p601_p4 = pnand %p600_p5, %p594_p6 }
  0x48   : > { %604 = shalt.err (!%p601_p4)
}
  0x49   : > { %477 = dma.hbm_to_vmem [thread:$0]  (!%p796_p0), %s838_s18, 256, %s848_s28, %s157_s30, %s694_s7, %s694_s7, %s695_s8  }
  0x4a   : > { %181 = sbr.rel (%p842_p12) target bundleno = 515 (0x203), region = 28  ;;  %s882_s4 = sand.u32 (!%p842_p12), 1, %s675_s10  }
  0x4b   : > { %s452_s6 = sshll.u32 (!%p842_p12), %s882_s4, 4  ;;  %s184_s29 = scalar_lea.sflag (!%p842_p12), [#allocation5], %s882_s4 }
  0x4c   : > { %s187_s5 = scalar_lea.vmem (!%p842_p12), [#allocation4], %s452_s6  ;;  %p961_p8 = scmp.ne.s32.totalorder (!%p842_p12), %s955_s21, 0 }
  0x51   : > { %658 = dma.done.wait (%p961_p8), %s184_s29, 256  }
  0x52   : > { %660 = vsyncadd (%p961_p8), %s184_s29, 4294967040  ;;  %s193_s25 = scalar_lea.sflag [#allocation8], %s882_s4  ;;  %s196_s7 = scalar_lea.vmem [#allocation7], %s452_s6 }
  0x53   : > { %662 = dma.done.wait (%p961_p8), %s193_s25, 256  }
  0x54   : > { %664 = vsyncadd (%p961_p8), %s193_s25, 4294967040  ;;  %v231_v0 = vld [vmem:[%s196_s7] sm:$0xff]  ;;  %v232_v2 = vld [vmem:[%s196_s7 + $0x8] sm:$0xff]  ;;  %s697_s8 = smov 1   ;;  %v292_v8 = vlaneseq  ;;  %s454_s19 = sshll.u32 %s683_s12, 4 }
  0x55   : > { %v229_v1 = vld [vmem:[%s187_s5] sm:$0xff]  ;;  %v235_v3 = vmul.f32 %v231_v0, %v231_v0  ;;  %v230_v5 = vld [vmem:[%s187_s5 + $0x8] sm:$0xff]  ;;  %v236_v6 = vmul.f32 %v232_v2, %v232_v2  ;;  %s220_s28 = scalar_lea.vmem [#allocation9], %s882_s4  ;;  %s900_s20 = scalar_lea.hbm %s951_s2, %s454_s19 }
  0x56   : > { %v233_v4 = vmul.f32 %v229_v1, %v229_v1  ;;  %v234_v7 = vmul.f32 %v230_v5, %v230_v5  ;;  %v293_v9 = vand.u32 127, %v292_v8  ;;  %s338_s30 = sshll.u32 %s220_s28, 4  ;;  %s326_s27 = scalar_lea.sflag [#allocation6], %s882_s4  ;;  %s902_s30 = int_to_ptr.vmem [resolvable:$true] %s338_s30 }
  0x57   : > { %243 = vrot.lane.b32.xlu1 %v235_v3, %s697_s8  ;;  %v286_v10 = vadd.f32 %v236_v6, %v235_v3  ;;  %s605_s6 = scalar_lea.vmem %s902_s30, 16  ;;  %p962_p3 = scmp.ne.s32.totalorder %s956_s22, 0 }
  0x58   : > { %237 = vrot.lane.b32.xlu0 %v233_v4, %s697_s8  ;;  %v296_v39 = vxor.u32 1, %v293_v9  ;;  %p606_p0 = scmp.ne.s32.totalorder %s902_s30, %s605_s6  ;;  %s698_s12 = smov [#allocation9]  }
  0x59   : > { %s609_s29 = sshll.u32 %s698_s12, 4  ;;  %s610_s29 = int_to_ptr.vmem [resolvable:$false] %s609_s29 }
  0x5a   : > { %p607_p12 = pnand %p606_p0, %p962_p3  ;;  %s611_s5 = scalar_lea.vmem %s610_s29, 32 }
  0x5b   : > { %245 = vrot.lane.b32.xlu1 %v236_v6, %s697_s8  ;;  %p612_p7 = scmp.lt.s32.totalorder %s902_s30, %s610_s29  ;;  %p613_p10 = scmp.lt.s32.totalorder %s611_s5, %s605_s6 }
  0x5c   : > { %239 = vrot.lane.b32.xlu0 %v234_v7, %s697_s8  ;;  %p608_p13 = pneg %p607_p12 }
  0x5d   : > { %p614_p9 = por %p613_p10, %p612_p7 }
  0x5f   : > { %p615_p11 = pnand %p614_p9, %p608_p13 }
  0x60   : > { %294 = vrot.lane.b32.xlu0 %v293_v9, %s697_s8 }
  0x7f   : > { %310 = vadd.xlane.f32.xlu0 %v286_v10 }
  0xc9   : > { %v244_v11 = vpop.permute.xlu1 %243 }
  0xca   : > { %v238_v12 = vpop.permute.xlu0 %237  ;;  %v247_v13 = vadd.f32 %v244_v11, %v235_v3 }
  0xcb   : > { %v241_v14 = vadd.f32 %v238_v12, %v233_v4 }
  0xcc   : > { %535 = vrsqrt.f32 %v247_v13  ;;  %vm265_vm0 = vcmp.eq.f32.partialorder %v247_v13, inf  ;;  %v268_v25 = vand.u32 2147483648, %v247_v13  ;;  %vm267_vm3 = vcmp.eq.f32.partialorder %v247_v13, 0.0 }
  0xcd   : > { %537 = vrsqrt.f32 %v241_v14  ;;  %v246_v15 = vpop.permute.xlu1 %245  ;;  %vm251_vm1 = vcmp.eq.f32.partialorder %v241_v14, inf  ;;  %v254_v23 = vand.u32 2147483648, %v241_v14  ;;  %vm253_vm2 = vcmp.eq.f32.partialorder %v241_v14, 0.0 }
  0xce   : > { %v240_v16 = vpop.permute.xlu0 %239  ;;  %v248_v17 = vadd.f32 %v246_v15, %v236_v6 }
  0xcf   : > { %v242_v18 = vadd.f32 %v240_v16, %v234_v7 }
  0xd0   : > { %539 = vrsqrt.f32 %v248_v17  ;;  %vm272_vm4 = vcmp.eq.f32.partialorder %v248_v17, inf  ;;  %v275_v33 = vand.u32 2147483648, %v248_v17  ;;  %vm274_vm6 = vcmp.eq.f32.partialorder %v248_v17, 0.0 }
  0xd1   : > { %541 = vrsqrt.f32 %v242_v18  ;;  %vm258_vm5 = vcmp.eq.f32.partialorder %v242_v18, inf  ;;  %v261_v34 = vand.u32 2147483648, %v242_v18  ;;  %vm260_vm7 = vcmp.eq.f32.partialorder %v242_v18, 0.0 }
  0xd2   : > { %v295_v41 = vpop.permute.xlu0 %294 }
  0xd3   : > { %vm297_vm8 = vcmp.eq.s32.totalorder %v295_v41, %v296_v39 }
  0xd6   : > { %v536_v19 = vpop.eup %535 }
  0xd7   : > { %v538_v20 = vpop.eup %537  ;;  %v264_v21 = vmul.f32 %v536_v19, %v247_v13 }
  0xd8   : > { %v250_v22 = vmul.f32 %v538_v20, %v241_v14 }
  0xd9   : > { %v266_v24 = vsel %vm265_vm0, %v247_v13, %v264_v21 }
  0xda   : > { %v540_v26 = vpop.eup %539  ;;  %v252_v27 = vsel %vm251_vm1, %v241_v14, %v250_v22  ;;  %v269_v30 = vsel %vm267_vm3, %v268_v25, %v266_v24 }
  0xdb   : > { %v542_v28 = vpop.eup %541  ;;  %v255_v29 = vsel %vm253_vm2, %v254_v23, %v252_v27  ;;  %v271_v31 = vmul.f32 %v540_v26, %v248_v17 }
  0xdc   : > { %v257_v32 = vmul.f32 %v542_v28, %v242_v18  ;;  %v277_v38 = vsub.f32 %v255_v29, %v269_v30 }
  0xdd   : > { %v273_v35 = vsel %vm272_vm4, %v248_v17, %v271_v31 }
  0xde   : > { %v259_v36 = vsel %vm258_vm5, %v242_v18, %v257_v32  ;;  %v276_v37 = vsel %vm274_vm6, %v275_v33, %v273_v35  ;;  %v279_v43 = vmul.f32 %v277_v38, %v277_v38 }
  0xdf   : > { %v262_v40 = vsel %vm260_vm7, %v261_v34, %v259_v36 }
  0xe0   : > { %v278_v42 = vsub.f32 %v262_v40, %v276_v37 }
  0xe2   : > { %v280_v44 = vmul.f32 %v278_v42, %v278_v42 }
  0xe4   : > { %v282_v45 = vadd.f32 %v280_v44, %v279_v43 }
  0xe6   : > { %v299_v46 = vsel %vm297_vm8, %v282_v45, 0.0 }
  0xe7   : > { %300 = vadd.xlane.f32.xlu1 %v299_v46 }
 0x10c   : > { %v311_v47 = vpop.xlane.xlu0 %310 }
 0x10d   : > { %v312_v48 = vrot.slane %v311_v47, 4 }
 0x10f   : > { %v313_v49 = vadd.f32 %v312_v48, %v311_v47 }
 0x111   : > { %v314_v50 = vrot.slane %v313_v49, 2 }
 0x113   : > { %v315_v54 = vadd.f32 %v314_v50, %v313_v49 }
 0x115   : > { %v316_v57 = vrot.slane %v315_v54, 1 }
 0x117   : > { %v317_v60 = vadd.f32 %v316_v57, %v315_v54 }
 0x174   : > { %v301_v51 = vpop.xlane.xlu1 %300 }
 0x175   : > { %v302_v52 = vrot.slane %v301_v51, 4 }
 0x177   : > { %v303_v53 = vadd.f32 %v302_v52, %v301_v51 }
 0x179   : > { %v304_v55 = vrot.slane %v303_v53, 2 }
 0x17b   : > { %v305_v56 = vadd.f32 %v304_v55, %v303_v53 }
 0x17d   : > { %v306_v58 = vrot.slane %v305_v56, 1 }
 0x17f   : > { %v307_v59 = vadd.f32 %v306_v58, %v305_v56 }
 0x181   : > { %459 = vpush %v307_v59 }
 0x182   : > { %461 = vpush %v317_v60 }
 0x1b2   : > { %s460_s21 = spop %459 }
 0x1b3   : > { %s462_s18 = spop %461 }
 0x1b4   : > { %v319_v61 = vstv %s462_s18 }
 0x1b5   : > { %543 = vrcp.f32 %v319_v61 }
 0x1bf   : > { %v544_v62 = vpop.eup %543 }
 0x1c0   : > { %463 = vpush %v544_v62 }
 0x1f1   : > { %s464_s3 = spop %463 }
 0x1f2   : > { %s322_s15 = smul.f32 %s464_s3, %s460_s21 }
 0x1f4   : > { %v323_v63 = vstv %s322_s15 }
 0x1f5   : > { %324 = vst [vmem:[%s220_s28] sm:$0x1] %v323_v63 }
 0x1f6   : > { %618 = shalt.err (!%p615_p11)
}
 0x1f7   : > { %s619_s4 = scalar_lea.hbm %s900_s20, 16  ;;  %s623_s8 = scalar_lea.hbm %s951_s2, 32 }
 0x1f8   : > { %p620_p1 = scmp.ne.s32.totalorder %s900_s20, %s619_s4  ;;  %p624_p5 = scmp.lt.u32.totalorder %s900_s20, %s951_s2 }
 0x1f9   : > { %p625_p4 = scmp.lt.u32.totalorder %s623_s8, %s619_s4  ;;  %p627_p0 = scmp.lt.u32.totalorder %s619_s4, %s900_s20 }
 0x1fa   : > { %p621_p6 = pnand %p620_p1, %p962_p3 }
 0x1fb   : > { %p626_p8 = por %p625_p4, %p624_p5 }
 0x1fc   : > { %p622_p2 = pneg %p621_p6 }
 0x1fd   : > { %p628_p12 = por %p627_p0, %p626_p8 }
 0x1ff   : > { %p629_p13 = pnand %p628_p12, %p622_p2 }
 0x201   : > { %632 = shalt.err (!%p629_p13)
}
 0x202   : > { %469 = dma.vmem_to_hbm [thread:$0]  (%p962_p3), %s902_s30, 16, %s900_s20, %s326_s27  }
 0x203 PF: > { %s350_s19 = sand.u32 1, %s671_s9   ;;  %p963_p7 = scmp.ne.s32.totalorder %s957_s24, 0 }
 0x204   : > { %p964_p10 = scmp.ge.s32.totalorder %s691_s14, 2  ;;  %s351_s28 = scalar_lea.sflag [#allocation6], %s350_s19 }
 0x206   : > { %p479_p9 = pnand %p964_p10, %p963_p7 }
 0x208   : > { %666 = dma.done.wait (!%p479_p9), %s351_s28, 16  }
 0x209   : > { %668 = vsyncadd (!%p479_p9), %s351_s28, 4294967280  ;;  %s21_s14 = sadd.s32 1, %s691_s14   ;;  %s965_s9 = smov %s675_s10 }
 0x20a   : > { %p18_p11 = scmp.ge.s32.totalorder %s21_s14, 4   ;;  %s966_s10 = smov %s679_s11 }
 0x20b   : > { %s967_s11 = smov %s770_s23  ;;  %s968_s12 = smov %s687_s13 }
 0x20c   : > { %s969_s13 = smov %s971_s17  ;;  %20 = sbr.rel (!%p18_p11) target bundleno = 8 (0x8), region = 94 }
 0x213   :  { %355 = vsyncpa [#allocation5], 1 }
 0x214   :  { %357 = vsyncpa [#allocation5 + $0x1], 1 }
 0x215   :  { %358 = vsyncpa [#allocation8], 1 }
 0x216   :  { %360 = vsyncpa [#allocation8 + $0x1], 1 }
 0x217   :  { %361 = vsyncpa [#allocation6], 1 }
 0x218   :  { %363 = vsyncpa [#allocation6 + $0x1], 1 }

</bundles_post_ra>
